<compile_context>
chip_gen: v7x
topology: tpu7x:2x2x1
jax: 0.10.0
libtpu: 0.0.40
codegen_flags: <defaults>
</compile_context>

<pallas_src>
import math
from functools import partial

import jax
import jax.numpy as jnp
from jax import lax
from jax.experimental import pallas as pl
from jax.experimental.pallas import tpu as pltpu


_NORM_EPS = 1e-12                 # torch.nn.functional.normalize default eps
_EPS_SQ = _NORM_EPS * _NORM_EPS


def _round_down(x, m):
    return (x // m) * m


def _vmem_capacity_bytes():
    """Physical VMEM per core; falls back to 128 MiB if the query fails."""
    try:
        cap = int(pltpu.get_tpu_info().vmem_capacity_bytes)
        if cap > 0:
            return cap
    except Exception:
        pass
    return 128 << 20


# ---------------------------------------------------------------------------
# Prologue kernel: row-wise L2 normalization  x / max(||x||_2, eps)
# ---------------------------------------------------------------------------
def _normalize_kernel(x_ref, o_ref, *, out_dtype):
    x = x_ref[...].astype(jnp.float32)
    inv = lax.rsqrt(jnp.maximum(jnp.sum(x * x, axis=1, keepdims=True), _EPS_SQ))
    o_ref[...] = (x * inv).astype(out_dtype)


def _normalize_rows(x, out_dtype, *, target_block_bytes=4 << 20):
    """Pure HBM-streaming pass; ~4 MiB row blocks for near-roofline DMA."""
    r, d = x.shape
    tr = max(16, min(1024, target_block_bytes // max(d * 4, 1)))
    tr = _round_down(tr, 16)
    if r <= tr:
        tr = r
    return pl.pallas_call(
        partial(_normalize_kernel, out_dtype=out_dtype),
        out_shape=jax.ShapeDtypeStruct((r, d), out_dtype),
        grid=(pl.cdiv(r, tr),),
        in_specs=[pl.BlockSpec((tr, d), lambda i: (i, 0))],
        out_specs=pl.BlockSpec((tr, d), lambda i: (i, 0)),
        compiler_params=pltpu.CompilerParams(
            dimension_semantics=("parallel",)),
    )(x)


# ---------------------------------------------------------------------------
# Main tiled kernel: cosine (+ ArcFace margin logits)
# ---------------------------------------------------------------------------
def _make_main_kernel(*, fuse_x_norm, with_label, write_cosine, class_axis,
                      tc, s, cos_m, sin_m, th, mm, easy_margin, mm_dtype):
    def kernel(*refs):
        it = iter(refs)
        x_ref = next(it)
        wt_ref = next(it)
        label_ref = next(it) if with_label else None
        cos_ref = next(it) if write_cosine else None
        loss_ref = next(it) if with_label else None

        x = x_ref[...]
        if fuse_x_norm:
            # Fused row-normalization of the resident x block: XLU reduce +
            # EUP rsqrt are non-binding slots, hidden under the weight DMA.
            xf = x.astype(jnp.float32)
            inv = lax.rsqrt(jnp.maximum(
                jnp.sum(xf * xf, axis=1, keepdims=True), _EPS_SQ))
            x = (xf * inv).astype(mm_dtype)

        # MXU-native (M, K) x (K, N): cached weight is pre-transposed (D, C).
        cosine = jnp.dot(x, wt_ref[...], preferred_element_type=jnp.float32)

        if write_cosine:
            cos_ref[...] = cosine

        if with_label:
            # Clamp before sqrt: MXU cosines can exceed 1 by a few ULPs.
            sine = jnp.sqrt(jnp.clip(1.0 - cosine * cosine, 0.0, 1.0))
            phi = cosine * cos_m - sine * sin_m
            if easy_margin:
                phi = jnp.where(cosine > 0.0, phi, cosine)
            else:
                phi = jnp.where(cosine - th > 0.0, phi, cosine - mm)
            # One-hot select without a float one_hot temp; offset iota by tile.
            j = pl.program_id(class_axis)
            cls_ids = lax.broadcasted_iota(jnp.int32, cosine.shape, 1) + j * tc
            mask = cls_ids == label_ref[...]
            # TODO(synk): if VALU ever binds on v7x after the bandwidth fixes,
            # compute phi only on the label column instead of the full tile.
            loss_ref[...] = jnp.where(mask, phi, cosine) * s
    return kernel


# ---------------------------------------------------------------------------
# Module
# ---------------------------------------------------------------------------
class ArcMarginProduct:
    """JAX/Pallas port of the PyTorch ArcMarginProduct module."""

    def __init__(self, in_feature, out_feature, s=32.0, m=0.4,
                 easy_margin=False, key=None, matmul_dtype=jnp.bfloat16):
        self.in_feature = in_feature
        self.out_feature = out_feature
        self.s = float(s)
        self.m = float(m)
        self.easy_margin = easy_margin
        self.cos_m = math.cos(m)
        self.sin_m = math.sin(m)
        self.th = math.cos(math.pi - m)
        self.mm = math.sin(math.pi - m) * m
        # bf16 operand streaming (f32 MXU accumulation) is the default perf
        # path on v5e/v6e/v7x; pass jnp.float32 to match PyTorch exactly.
        self.matmul_dtype = matmul_dtype
        # x is kept VMEM-resident (weight streamed exactly once) while its
        # double-buffered f32 block stays under this bound.
        self.max_resident_x_bytes = 16 << 20

        if key is None:
            key = jax.random.PRNGKey(0)
        bound = math.sqrt(6.0 / (in_feature + out_feature))   # xavier_uniform
        self.weight = jax.random.uniform(
            key, (out_feature, in_feature), dtype=jnp.float32,
            minval=-bound, maxval=bound)

        self._wn_t = None       # cached normalized weight, transposed (D, C)
        self._wn_src = None

    # -- F.normalize(weight).T, computed once while weight is unchanged ----
    def _normalized_weight_t(self):
        if self._wn_t is None or self._wn_src is not self.weight:
            wn = _normalize_rows(self.weight, self.matmul_dtype)   # (C, D)
            self._wn_t = jnp.transpose(wn)                         # (D, C)
            self._wn_src = self.weight
        return self._wn_t

    def __call__(self, x, label=None, return_cosine=True):
        B, D = x.shape
        C = self.out_feature
        assert D == self.in_feature
        with_label = label is not None
        if not with_label:
            return_cosine = True
        n_out = int(return_cosine) + int(with_label)

        mm_dtype = self.matmul_dtype
        ib = jnp.dtype(mm_dtype).itemsize
        wn_t = self._normalized_weight_t()                          # (D, C)

        cap = _vmem_capacity_bytes()
        budget = max(cap - (24 << 20), 24 << 20)        # tiles must fit here
        vmem_cap = max(min(cap - (16 << 20), 100 << 20), 32 << 20)
        tc_max = 1024 if cap >= (96 << 20) else 512
        tb_max = 512 if cap >= (96 << 20) else 256

        def pick_tc(need_fn):
            tc = C if C <= tc_max else _round_down(min(tc_max, C), 128)
            while tc > 128 and need_fn(tc) > budget:
                nxt = _round_down(max(tc // 2, 128), 128)
                if nxt == tc:
                    break
                tc = nxt
            return tc

        x_resident_bytes = 2 * B * D * 4                # f32, double-buffered
        lbl_bytes = (2 * B * 128 * 4) if with_label else 0
        min_tc = C if C <= 128 else 128

        def resident_need(tc):
            return (x_resident_bytes + lbl_bytes
                    + 2 * D * tc * ib + 2 * n_out * B * tc * 4)

        resident = (x_resident_bytes <= self.max_resident_x_bytes
                    and resident_need(min_tc) <= budget)

        params = dict(s=self.s, cos_m=self.cos_m, sin_m=self.sin_m,
                      th=self.th, mm=self.mm, easy_margin=self.easy_margin,
                      mm_dtype=mm_dtype)

        if resident:
            # -------- x resident, 1-D grid over class tiles ----------------
            tc = pick_tc(resident_need)
            nc = pl.cdiv(C, tc)
            in_specs = [
                pl.BlockSpec((B, D), lambda j: (0, 0)),     # DMA'd once
                pl.BlockSpec((D, tc), lambda j: (0, j)),    # weight stream
            ]
            args = [x, wn_t]
            if with_label:
                in_specs.append(pl.BlockSpec((B, 1), lambda j: (0, 0)))
                args.append(jnp.reshape(label, (B, 1)).astype(jnp.int32))
            out_block = pl.BlockSpec((B, tc), lambda j: (0, j))
            grid = (nc,)
            dims = ("parallel",)            # class axis -> v7x megacore
            kernel = _make_main_kernel(
                fuse_x_norm=True, with_label=with_label,
                write_cosine=return_cosine, class_axis=0, tc=tc, **params)
            vmem_need = resident_need(tc)
        else:
            # -------- fallback: 2-D grid, class axis leading ----------------
            # Weight tile is the revisited operand (streamed once); x tiles
            # are re-streamed (smaller).  x is pre-normalized by the prologue.
            # TODO(synk): add a D (contraction) split with an f32 accumulator
            # if 2*(tb+tc)*D*itemsize ever exceeds the VMEM budget (huge D).
            xn = _normalize_rows(x, mm_dtype)
            tb = B if B <= tb_max else tb_max

            def fb_need(tc):
                lbl_t = (2 * tb * 128 * 4) if with_label else 0
                return (2 * tb * D * ib + 2 * D * tc * ib + lbl_t
                        + 2 * n_out * tb * tc * 4)

            tc = pick_tc(fb_need)
            while fb_need(tc) > budget and tb > 8:
                tb = max(8, _round_down(tb // 2, 8))
                tc = pick_tc(fb_need)

            nb, nc = pl.cdiv(B, tb), pl.cdiv(C, tc)
            in_specs = [
                pl.BlockSpec((tb, D), lambda j, i: (i, 0)),
                pl.BlockSpec((D, tc), lambda j, i: (0, j)),   # revisited
            ]
            args = [xn, wn_t]
            if with_label:
                in_specs.append(pl.BlockSpec((tb, 1), lambda j, i: (i, 0)))
                args.append(jnp.reshape(label, (B, 1)).astype(jnp.int32))
            out_block = pl.BlockSpec((tb, tc), lambda j, i: (i, j))
            grid = (nc, nb)
            dims = ("parallel", "arbitrary")
            kernel = _make_main_kernel(
                fuse_x_norm=False, with_label=with_label,
                write_cosine=return_cosine, class_axis=0, tc=tc, **params)
            vmem_need = fb_need(tc)

        out_shapes, out_specs = [], []
        if return_cosine:
            out_shapes.append(jax.ShapeDtypeStruct((B, C), jnp.float32))
            out_specs.append(out_block)
        if with_label:
            out_shapes.append(jax.ShapeDtypeStruct((B, C), jnp.float32))
            out_specs.append(out_block)

        cost = pl.CostEstimate(
            flops=int(2 * B * C * D),
            transcendentals=int((B * C if with_label else 0) + B),
            bytes_accessed=int(B * D * 4 + C * D * ib + n_out * B * C * 4
                               + (B * 4 if with_label else 0)))

        vmem_limit = int(min(max(vmem_need + (8 << 20), 32 << 20), vmem_cap))

        outs = pl.pallas_call(
            kernel,
            out_shape=tuple(out_shapes),
            grid=grid,
            in_specs=in_specs,
            out_specs=tuple(out_specs),
            compiler_params=pltpu.CompilerParams(
                dimension_semantics=dims,
                vmem_limit_bytes=vmem_limit),
            cost_estimate=cost,
        )(*args)

        if not with_label:
            return outs[0]
        if not return_cosine:
            return outs[0]
        return outs[0], outs[1]


# ---------------------------------------------------------------------------
# Pure-JAX reference mirroring the PyTorch forward
# ---------------------------------------------------------------------------
def _reference(x, weight, label, s, m, easy_margin=False):
    eps = 1e-12
    xn = x / jnp.maximum(jnp.linalg.norm(x, axis=1, keepdims=True), eps)
    wn = weight / jnp.maximum(jnp.linalg.norm(weight, axis=1, keepdims=True), eps)
    cosine = xn @ wn.T
    sine = jnp.sqrt(jnp.clip(1.0 - cosine ** 2, 0.0, 1.0))
    cos_m, sin_m = math.cos(m), math.sin(m)
    th = math.cos(math.pi - m)
    mm = math.sin(math.pi - m) * m
    phi = cosine * cos_m - sine * sin_m
    if easy_margin:
        phi = jnp.where(cosine > 0, phi, cosine)
    else:
        phi = jnp.where(cosine - th > 0, phi, cosine - mm)
    one_hot = jax.nn.one_hot(label, cosine.shape[1], dtype=cosine.dtype)
    loss = (one_hot * phi + (1.0 - one_hot) * cosine) * s
    return cosine, loss


if __name__ == "__main__":
    key = jax.random.PRNGKey(0)
    k_x, k_w, k_l = jax.random.split(key, 3)

    B, IN_F, OUT_F = 8, 32, 16
    x = jax.random.normal(k_x, (B, IN_F), dtype=jnp.float32)
    label = jax.random.randint(k_l, (B,), 0, OUT_F, dtype=jnp.int32)

    # --- exactness check: f32 streaming path -------------------------------
    mod_f32 = ArcMarginProduct(IN_F, OUT_F, s=32.0, m=0.4, easy_margin=False,
                               key=k_w, matmul_dtype=jnp.float32)
    ref_cos, ref_loss = _reference(x, mod_f32.weight, label, 32.0, 0.4)

    cos_only = jax.block_until_ready(mod_f32(x, None))
    cos_f, loss_f = mod_f32(x, label)
    cos_f = jax.block_until_ready(cos_f)
    loss_f = jax.block_until_ready(loss_f)
    assert jnp.allclose(cos_only, ref_cos, atol=1e-5, rtol=1e-5)
    assert jnp.allclose(cos_f, ref_cos, atol=1e-5, rtol=1e-5)
    assert jnp.allclose(loss_f, ref_loss, atol=1e-4, rtol=1e-4)

    # --- exercise the non-resident fallback (class-leading 2-D grid) -------
    mod_f32.max_resident_x_bytes = 0
    cos_fb, loss_fb = mod_f32(x, label)
    cos_fb = jax.block_until_ready(cos_fb)
    loss_fb = jax.block_until_ready(loss_fb)
    assert jnp.allclose(cos_fb, ref_cos, atol=1e-5, rtol=1e-5)
    assert jnp.allclose(loss_fb, ref_loss, atol=1e-4, rtol=1e-4)

    # --- default bf16 perf path (loose tolerance) + weight-cache reuse -----
    mod_bf16 = ArcMarginProduct(IN_F, OUT_F, s=32.0, m=0.4, easy_margin=False,
                                key=k_w)
    cos_b, loss_b = mod_bf16(x, label)
    cos_b = jax.block_until_ready(cos_b)
    loss_b = jax.block_until_ready(loss_b)
    assert jnp.allclose(cos_b, ref_cos, atol=2e-2, rtol=2e-2)
    assert jnp.allclose(loss_b, ref_loss, atol=0.5, rtol=2e-2)

    cos_b2, loss_b2 = mod_bf16(x, label)          # reuses cached wn_t
    cos_b2 = jax.block_until_ready(cos_b2)
    loss_b2 = jax.block_until_ready(loss_b2)
    assert jnp.allclose(cos_b2, cos_b)
    assert jnp.allclose(loss_b2, loss_b)

    # --- writeback-trim option: loss only ----------------------------------
    loss_only = jax.block_until_ready(mod_bf16(x, label, return_cosine=False))
    assert jnp.allclose(loss_only, loss_b)

    print("KERNEL_OK")
</pallas_src>

<mosaic_0001>
module attributes {stable_mosaic.version = 11 : i64} {
  func.func @_normalize_kernel(%arg0: i32, %arg1: memref<16x32xf32, #tpu.memory_space<vmem>>, %arg2: memref<16x32xf32, #tpu.memory_space<vmem>>) attributes {dimension_semantics = [#tpu.dimension_semantics<parallel>], iteration_bounds = array<i64: 1>, scalar_prefetch = 0 : i64, scratch_operands = 0 : i64, tpu.core_type = #tpu.core_type<tc>, window_params = [{transform_indices = @transform_0, window_bounds = array<i64: 16, 32>}, {transform_indices = @transform_1, window_bounds = array<i64: 16, 32>}]} {
    %c0 = arith.constant 0 : index
    %c0_0 = arith.constant 0 : index
    %0 = vector.load %arg1[%c0, %c0_0] : memref<16x32xf32, #tpu.memory_space<vmem>>, vector<16x32xf32>
    %1 = arith.mulf %0, %0 : vector<16x32xf32>
    %cst = arith.constant dense<0.000000e+00> : vector<16xf32>
    %2 = vector.multi_reduction <add>, %1, %cst [1] : vector<16x32xf32> to vector<16xf32>
    %3 = vector.shape_cast %2 : vector<16xf32> to vector<16x1xf32>
    %cst_1 = arith.constant 1.000000e-24 : f32
    %4 = vector.broadcast %cst_1 : f32 to vector<16x1xf32>
    %5 = arith.maximumf %3, %4 : vector<16x1xf32>
    %6 = math.rsqrt %5 : vector<16x1xf32>
    %7 = vector.broadcast %6 : vector<16x1xf32> to vector<16x32xf32>
    %8 = arith.mulf %0, %7 : vector<16x32xf32>
    %c0_2 = arith.constant 0 : index
    %c0_3 = arith.constant 0 : index
    %9 = vector.load %arg2[%c0_2, %c0_3] : memref<16x32xf32, #tpu.memory_space<vmem>>, vector<16x32xf32>
    tpu.vector_store %arg2[%c0_2, %c0_3], %8 {strides = array<i32>} : memref<16x32xf32, #tpu.memory_space<vmem>>, vector<16x32xf32>,
    return
  }
  func.func @transform_0(%arg0: i32) -> (i32, i32) {
    %c0_i32 = arith.constant 0 : i32
    %c0_i32_0 = arith.constant 0 : i32
    return %arg0, %c0_i32 : i32, i32
  }
  func.func @transform_1(%arg0: i32) -> (i32, i32) {
    %c0_i32 = arith.constant 0 : i32
    %c0_i32_0 = arith.constant 0 : i32
    return %arg0, %c0_i32 : i32, i32
  }
}

</mosaic_0001>

<bundles_post_ra>
// kernel: tpu_custom_call.1
= control target key start
LH: loop header
LB: loop body
LE: loop exit
PB: predicated region body
PF: predicated region fallthrough
CT: control target
= control target key end

     0   :  { %6 = vsyncpa [#allocation3], 0  ;;  %s163_s0 = inlined_call_operand.hbm [shape: f32[16,32], index: 0, kind: input, shape index: {}]   ;;  %s164_s1 = inlined_call_operand.hbm [shape: f32[16,32], index: 1, kind: output, shape index: {}]  }
   0x1   :  { %7 = vsyncpa [#allocation4], 0  ;;  %s115_s6 = smov [#allocation2]   ;;  %s67_s10 = scalar_lea.hbm %s163_s0, 256 }
   0x2   :  { %s13_s7 = sshll.u32 %s115_s6, 4  ;;  %p68_p0 = scmp.ne.s32.totalorder %s163_s0, %s67_s10  ;;  %s14_s7 = int_to_ptr.vmem [resolvable:$true] %s13_s7 }
   0x3   :  { %p71_p1 = scmp.lt.u32.totalorder %s67_s10, %s163_s0 }
   0x5   :  { %p73_p2 = pnand %p71_p1, %p68_p0 }
   0x7   :  { %76 = shalt.err (!%p73_p2)
}
   0x8   :  { %s77_s15 = scalar_lea.vmem %s14_s7, 256  ;;  %p82_p4 = scmp.lt.s32.totalorder %s14_s7, %s14_s7 }
   0x9   :  { %p78_p3 = scmp.ne.s32.totalorder %s14_s7, %s77_s15  ;;  %p83_p5 = scmp.lt.s32.totalorder %s77_s15, %s77_s15 }
   0xb   :  { %p84_p6 = por %p83_p5, %p82_p4 }
   0xd   :  { %p85_p7 = pnand %p84_p6, %p78_p3 }
   0xf   :  { %88 = shalt.err (!%p85_p7)
}
  0x10   :  { %s116_s16 = smov 128   ;;  %s117_s17 = smov 8  }
  0x11   :  { %19 = dma.hbm_to_vmem [thread:$0]  %s163_s0, 256, %s14_s7, [#allocation3], %s116_s16, %s116_s16, %s117_s17  }
  0x12   :  { %111 = dma.done.wait [#allocation3], 256  }
  0x13   :  { %112 = vsyncadd [#allocation3], 4294967040  ;;  %v23_v0 = vld [vmem:[#allocation2] sm:$0xff]  ;;  %vm27_vm0 = vcmask 261120   ;;  %v24_v1 = vld [vmem:[#allocation2 + $0x8] sm:$0xff]  ;;  %s118_s0 = smov [#allocation5]  }
  0x14   :  { %v25_v2 = vmul.f32 %v23_v0, %v23_v0  ;;  %v26_v3 = vmul.f32 %v24_v1, %v24_v1  ;;  %s47_s20 = sshll.u32 %s118_s0, 4  ;;  %s48_s20 = int_to_ptr.vmem [resolvable:$true] %s47_s20 }
  0x15   :  { %s89_s21 = scalar_lea.vmem %s48_s20, 256  ;;  %p94_p9 = scmp.lt.s32.totalorder %s48_s20, %s48_s20 }
  0x16   :  { %v28_v4 = vsel %vm27_vm0, %v25_v2, 0.0  ;;  %v31_v5 = vsel %vm27_vm0, %v26_v3, 0.0  ;;  %p90_p8 = scmp.ne.s32.totalorder %s48_s20, %s89_s21  ;;  %p95_p10 = scmp.lt.s32.totalorder %s89_s21, %s89_s21 }
  0x17   :  { %29 = vadd.xlane.f32.xlu0 %v28_v4 }
  0x18   :  { %p96_p11 = por %p95_p10, %p94_p9 }
  0x1a   :  { %p97_p12 = pnand %p96_p11, %p90_p8 }
  0x1b   :  { %32 = vadd.xlane.f32.xlu0 %v31_v5 }
  0xa4   :  { %v30_v6 = vpop.xlane.xlu0 %29 }
  0xa5   :  { %v34_v7 = vmax.f32 %v30_v6, 1e-24 }
  0xa7   :  { %63 = vrsqrt.f32 %v34_v7 }
  0xa8   :  { %v33_v8 = vpop.xlane.xlu0 %32 }
  0xa9   :  { %v35_v9 = vmax.f32 %v33_v8, 1e-24 }
  0xab   :  { %65 = vrsqrt.f32 %v35_v9 }
  0xb1   :  { %v64_v10 = vpop.eup %63 }
  0xb2   :  { %v38_v11 = vmul.f32 %v64_v10, %v23_v0 }
  0xb4   :  { %40 = vst.msk [vmem:[#allocation5] sm:$0xff] %vm27_vm0, %v38_v11 }
  0xb5   :  { %v66_v12 = vpop.eup %65 }
  0xb6   :  { %v39_v13 = vmul.f32 %v66_v12, %v24_v1 }
  0xb8   :  { %41 = vst.msk [vmem:[#allocation5 + $0x8] sm:$0xff] %vm27_vm0, %v39_v13 }
  0xb9   :  { %100 = shalt.err (!%p97_p12)
}
  0xba   :  { %s101_s24 = scalar_lea.hbm %s164_s1, 256 }
  0xbb   :  { %p102_p13 = scmp.ne.s32.totalorder %s164_s1, %s101_s24  ;;  %p105_p0 = scmp.lt.u32.totalorder %s101_s24, %s164_s1 }
  0xbd   :  { %p107_p1 = pnand %p105_p0, %p102_p13 }
  0xbf   :  { %110 = shalt.err (!%p107_p1)
}
  0xc0   :  { %53 = dma.vmem_to_hbm [thread:$0]  %s48_s20, 256, %s164_s1, [#allocation4], %s116_s16, %s116_s16, %s117_s17  }
  0xc1   :  { %113 = dma.done.wait [#allocation4], 256  }
  0xc2   :  { %114 = vsyncadd [#allocation4], 4294967040 }
  0xc3   :  { %57 = vsyncpa [#allocation3], 1 }
  0xc4   :  { %58 = vsyncpa [#allocation4], 1 }

</bundles_post_ra>
